<compile_context>
chip_gen: v6e
topology: v6e:2x2x1
jax: 0.10.0
libtpu: 0.0.40
codegen_flags: <defaults>
</compile_context>

<pallas_src>
import jax
import jax.numpy as jnp
from jax.experimental import pallas as pl
from jax.experimental.pallas import tpu as pltpu


def _round_up(x, m):
    return ((x + m - 1) // m) * m


def _vmem_capacity_bytes():
    """Per-core physical VMEM; conservative fallback if the query is unavailable."""
    try:
        return int(pltpu.get_tpu_info().vmem_capacity_bytes)
    except Exception:
        return 64 * 1024 * 1024  # v7x per-TensorCore (smallest current generation)


def _tensorized_linear_kernel(x_ref, a_ref, b_ref, bias_ref, o_ref, t_ref):
    # Grid: (i over M row tiles [parallel], j over N output tiles [arbitrary]).
    #   x_ref    : (tm, Kp)   row tile of flattened, padded input
    #   a_ref    : (Kp, Kr)   resident factor A (padded, single-buffered)
    #   b_ref    : (Kr, tn)   N-tile of factor B (fully resident when it fits)
    #   bias_ref : (1, tn)    N-tile of bias
    #   o_ref    : (tm, tn)   output tile
    #   t_ref    : (tm, Kr)   scratch for the first contraction, stored in the
    #                         MXU-input dtype (cast once at j == 0)
    j = pl.program_id(1)

    # First matmul does not depend on the N tile: compute once per row tile.
    # NOTE: reuse of t_ref across j is only valid because j is the innermost,
    # serially executed ("arbitrary") grid axis: all j steps for a given row
    # tile i run back-to-back on one core before i advances.  Do not reorder
    # the grid axes or mark j "parallel".
    @pl.when(j == 0)
    def _():
        t_ref[...] = jnp.dot(
            x_ref[...], a_ref[...], preferred_element_type=jnp.float32
        ).astype(t_ref.dtype)

    out = jnp.dot(t_ref[...], b_ref[...], preferred_element_type=jnp.float32)
    o_ref[...] = (out + bias_ref[...].astype(jnp.float32)).astype(o_ref.dtype)


def tensorized_linear(x, ttensors, bias, output_dim, *, tn_target=512):
    """Pallas equivalent of TensorizedLinearLayer_t.forward (use_full_contraction=True),
    specialized to the 2-factor chain out = ((x @ A) @ B) + bias."""
    # TODO(synk): arbitrary `full_path`/`path` contraction orders with >2 ttensors
    # would require statically unrolling that path inside the kernel.
    input_dim = x.shape[-1]
    a, b = ttensors                              # [input_dim, rank], [rank, output_dim]
    rank = a.shape[1]
    assert a.shape == (input_dim, rank)
    assert b.shape == (rank, output_dim)

    x2 = x.reshape(-1, input_dim)                # same as x.view([-1, input_dim])
    m = x2.shape[0]

    x_isz = jnp.dtype(x.dtype).itemsize
    a_isz = jnp.dtype(a.dtype).itemsize
    b_isz = jnp.dtype(b.dtype).itemsize
    bias_dtype = x.dtype if bias is None else bias.dtype
    bias_isz = jnp.dtype(bias_dtype).itemsize

    # ------------- lane-dense padding targets -------------
    kp = _round_up(input_dim, 128)               # contraction dim of matmul 1
    kr = _round_up(rank, 128)                    # contraction dim of matmul 2
    n0 = _round_up(output_dim, 128)              # lane-dense output width

    cap = _vmem_capacity_bytes()
    headroom = 8 * 1024 * 1024
    budget = min(cap - headroom, int(cap * 0.8))  # what tiles may occupy

    # ------------- N tiling: keep B (+ bias) resident when small -------------
    b_resident = kr * n0 * b_isz <= 8 * 1024 * 1024
    if b_resident:
        tn = np_ = n0                            # single N tile, B DMA'd once
    else:
        tn = min(tn_target, n0)
        np_ = _round_up(n0, tn)                  # pad N UP instead of shrinking tn

    # Intermediate t = x @ A is stored once in the MXU-input dtype for matmul 2.
    t_dtype = b.dtype
    t_isz = jnp.dtype(t_dtype).itemsize

    # ------------- VMEM accounting & row-tile selection -------------
    resident = kp * kr * a_isz                                   # A, 1 buffer
    if b_resident:
        resident += kr * np_ * b_isz + np_ * bias_isz            # B + bias, 1 buffer
    else:
        resident += 2 * (kr * tn * b_isz + tn * bias_isz)        # double-buffered tiles

    max_tm = 1024 if x_isz <= 2 else 512
    tm = 16
    for cand in (1024, 512, 256, 128, 64, 32, 16):
        if cand > max_tm:
            continue
        per_row = (2 * cand * kp * x_isz          # x tile (double-buffered)
                   + 2 * cand * tn * x_isz        # out tile (double-buffered)
                   + cand * kr * t_isz)           # t scratch
        if resident + per_row <= budget:
            tm = cand
            break
    tm = min(tm, _round_up(m, 16))               # don't over-pad tiny batches
    mp = _round_up(m, tm)

    # TODO(synk): for input_dim large enough that resident A + the x row tile
    # overflow v7x's 64 MiB VMEM, K-tile the first contraction (extra grid axis
    # or pltpu.emit_pipeline under j == 0) instead of shrinking tm.

    # ------------- padded operands -------------
    x_p = jnp.pad(x2, ((0, mp - m), (0, kp - input_dim)))
    a_p = jnp.pad(a, ((0, kp - input_dim), (0, kr - rank)))
    b_p = jnp.pad(b, ((0, kr - rank), (0, np_ - output_dim)))
    if bias is None:
        bias_p = jnp.zeros((1, np_), dtype=bias_dtype)
    else:
        bias_p = jnp.pad(bias.reshape(1, output_dim), ((0, 0), (0, np_ - output_dim)))

    grid = (mp // tm, np_ // tn)

    # ------------- cost / VMEM hints -------------
    flops = 2 * mp * kp * kr + 2 * mp * kr * np_
    b_reads = 1 if b_resident else grid[0]       # B re-streamed once per row tile
    bytes_accessed = int(
        x_p.size * x_isz + a_p.size * a_isz + b_reads * b_p.size * b_isz
        + bias_p.size * bias_isz + mp * np_ * x_isz)

    vmem_est = (resident
                + 2 * tm * kp * x_isz
                + 2 * tm * tn * x_isz
                + tm * kr * t_isz)
    vmem_limit = int(min(max(int(vmem_est * 1.5) + (4 << 20), 32 << 20),
                         cap - headroom))

    def _build(single_buffer_resident):
        pm = dict(pipeline_mode=pl.Buffered(1)) if single_buffer_resident else {}
        a_spec = pl.BlockSpec((kp, kr), lambda i, j: (0, 0), **pm)
        if b_resident:
            b_spec = pl.BlockSpec((kr, tn), lambda i, j: (0, 0), **pm)
            bias_spec = pl.BlockSpec((1, tn), lambda i, j: (0, 0), **pm)
        else:
            b_spec = pl.BlockSpec((kr, tn), lambda i, j: (0, j))
            bias_spec = pl.BlockSpec((1, tn), lambda i, j: (0, j))
        return pl.pallas_call(
            _tensorized_linear_kernel,
            out_shape=jax.ShapeDtypeStruct((mp, np_), x.dtype),
            grid_spec=pltpu.PrefetchScalarGridSpec(
                num_scalar_prefetch=0,
                grid=grid,
                in_specs=[
                    pl.BlockSpec((tm, kp), lambda i, j: (i, 0)),   # x row tile
                    a_spec,                                        # A resident
                    b_spec,                                        # B resident or N-tiled
                    bias_spec,                                     # bias
                ],
                out_specs=pl.BlockSpec((tm, tn), lambda i, j: (i, j)),
                scratch_shapes=[pltpu.VMEM((tm, kr), t_dtype)],
            ),
            compiler_params=pltpu.CompilerParams(
                dimension_semantics=("parallel", "arbitrary"),
                vmem_limit_bytes=vmem_limit,
            ),
            cost_estimate=pl.CostEstimate(
                flops=flops, transcendentals=0, bytes_accessed=bytes_accessed),
        )

    try:
        out = _build(True)(x_p, a_p, b_p, bias_p)
    except Exception:
        # pipeline_mode=pl.Buffered(1) unsupported on this jax version: fall back
        # to default double-buffered specs rather than failing to run.
        out = _build(False)(x_p, a_p, b_p, bias_p)

    out = out[:m, :output_dim]
    return out.reshape(x.shape[:-1] + (output_dim,))


if __name__ == "__main__":
    # Small shapes consistent with the module: seq-of-tokens input, hidden=32.
    batch, seq = 2, 8
    input_dim, rank, output_dim = 32, 16, 32

    key = jax.random.PRNGKey(0)
    kx, ka, kb, kbias = jax.random.split(key, 4)

    # Deterministic parameter init mirroring __init__:
    #   ttensor_i = torch.randn(ts)  -> standard normal
    #   bias      = torch.rand([output_dim]) -> uniform [0, 1)
    A = jax.random.normal(ka, (input_dim, rank), dtype=jnp.float32)
    B = jax.random.normal(kb, (rank, output_dim), dtype=jnp.float32)
    bias = jax.random.uniform(kbias, (output_dim,), dtype=jnp.float32)

    x = jax.random.normal(kx, (batch, seq, input_dim), dtype=jnp.float32)

    out = tensorized_linear(x, (A, B), bias, output_dim)
    out = jax.block_until_ready(out)

    # Reference (plain JAX) = full_contraction_forward + bias
    ref = (x.reshape(-1, input_dim) @ A @ B).reshape(batch, seq, output_dim) + bias
    assert out.shape == (batch, seq, output_dim)
    assert jnp.allclose(out, ref, atol=1e-4, rtol=1e-4)

    print("KERNEL_OK")
</pallas_src>

<mosaic_0001>
module attributes {stable_mosaic.version = 11 : i64} {
  func.func @_tensorized_linear_kernel(%arg0: i32, %arg1: i32, %arg2: memref<16x128xf32, #tpu.memory_space<vmem>>, %arg3: memref<128x128xf32, #tpu.memory_space<vmem>>, %arg4: memref<128x128xf32, #tpu.memory_space<vmem>>, %arg5: memref<1x128xf32, #tpu.memory_space<vmem>>, %arg6: memref<16x128xf32, #tpu.memory_space<vmem>>, %arg7: memref<16x128xf32, #tpu.memory_space<vmem>>) attributes {dimension_semantics = [#tpu.dimension_semantics<parallel>, #tpu.dimension_semantics<arbitrary>], iteration_bounds = array<i64: 1, 1>, scalar_prefetch = 0 : i64, scratch_operands = 1 : i64, tpu.core_type = #tpu.core_type<tc>, window_params = [{transform_indices = @transform_0, window_bounds = array<i64: 16, 128>}, {pipeline_mode = #tpu.pipeline_mode<synchronous>, transform_indices = @transform_1, window_bounds = array<i64: 128, 128>}, {pipeline_mode = #tpu.pipeline_mode<synchronous>, transform_indices = @transform_2, window_bounds = array<i64: 128, 128>}, {pipeline_mode = #tpu.pipeline_mode<synchronous>, transform_indices = @transform_3, window_bounds = array<i64: 1, 128>}, {transform_indices = @transform_4, window_bounds = array<i64: 16, 128>}]} {
    %c0_i32 = arith.constant 0 : i32
    %0 = arith.cmpi eq, %arg1, %c0_i32 : i32
    %1 = arith.extui %0 : i1 to i32
    %c0_i32_0 = arith.constant 0 : i32
    %2 = arith.cmpi ne, %1, %c0_i32_0 : i32
    scf.if %2 {
      %c0_8 = arith.constant 0 : index
      %c0_9 = arith.constant 0 : index
      %10 = vector.load %arg2[%c0_8, %c0_9] : memref<16x128xf32, #tpu.memory_space<vmem>>, vector<16x128xf32>
      %c0_10 = arith.constant 0 : index
      %c0_11 = arith.constant 0 : index
      %11 = vector.load %arg3[%c0_10, %c0_11] : memref<128x128xf32, #tpu.memory_space<vmem>>, vector<128x128xf32>
      %cst_12 = arith.constant dense<0.000000e+00> : vector<16x128xf32>
      %12 = tpu.matmul %10, %11, %cst_12 {dimension_numbers = #tpu.dot_dimension_numbers<[1], [0], [0], [1], [0, 0, 1, 1], [], []>} : vector<16x128xf32>, vector<128x128xf32>, vector<16x128xf32> -> vector<16x128xf32>
      %c0_13 = arith.constant 0 : index
      %c0_14 = arith.constant 0 : index
      %13 = vector.load %arg7[%c0_13, %c0_14] : memref<16x128xf32, #tpu.memory_space<vmem>>, vector<16x128xf32>
      tpu.vector_store %arg7[%c0_13, %c0_14], %12 {strides = array<i32>} : memref<16x128xf32, #tpu.memory_space<vmem>>, vector<16x128xf32>,
    } else {
    }
    %c0 = arith.constant 0 : index
    %c0_1 = arith.constant 0 : index
    %3 = vector.load %arg7[%c0, %c0_1] : memref<16x128xf32, #tpu.memory_space<vmem>>, vector<16x128xf32>
    %c0_2 = arith.constant 0 : index
    %c0_3 = arith.constant 0 : index
    %4 = vector.load %arg4[%c0_2, %c0_3] : memref<128x128xf32, #tpu.memory_space<vmem>>, vector<128x128xf32>
    %cst = arith.constant dense<0.000000e+00> : vector<16x128xf32>
    %5 = tpu.matmul %3, %4, %cst {dimension_numbers = #tpu.dot_dimension_numbers<[1], [0], [0], [1], [0, 0, 1, 1], [], []>} : vector<16x128xf32>, vector<128x128xf32>, vector<16x128xf32> -> vector<16x128xf32>
    %c0_4 = arith.constant 0 : index
    %c0_5 = arith.constant 0 : index
    %6 = vector.load %arg5[%c0_4, %c0_5] : memref<1x128xf32, #tpu.memory_space<vmem>>, vector<1x128xf32>
    %7 = vector.broadcast %6 : vector<1x128xf32> to vector<16x128xf32>
    %8 = arith.addf %5, %7 : vector<16x128xf32>
    %c0_6 = arith.constant 0 : index
    %c0_7 = arith.constant 0 : index
    %9 = vector.load %arg6[%c0_6, %c0_7] : memref<16x128xf32, #tpu.memory_space<vmem>>, vector<16x128xf32>
    tpu.vector_store %arg6[%c0_6, %c0_7], %8 {strides = array<i32>} : memref<16x128xf32, #tpu.memory_space<vmem>>, vector<16x128xf32>,
    return
  }
  func.func @transform_0(%arg0: i32, %arg1: i32) -> (i32, i32) {
    %c0_i32 = arith.constant 0 : i32
    %c0_i32_0 = arith.constant 0 : i32
    return %arg0, %c0_i32 : i32, i32
  }
  func.func @transform_1(%arg0: i32, %arg1: i32) -> (i32, i32) {
    %c0_i32 = arith.constant 0 : i32
    %c0_i32_0 = arith.constant 0 : i32
    %c0_i32_1 = arith.constant 0 : i32
    return %c0_i32, %c0_i32_0 : i32, i32
  }
  func.func @transform_2(%arg0: i32, %arg1: i32) -> (i32, i32) {
    %c0_i32 = arith.constant 0 : i32
    %c0_i32_0 = arith.constant 0 : i32
    %c0_i32_1 = arith.constant 0 : i32
    return %c0_i32, %c0_i32_0 : i32, i32
  }
  func.func @transform_3(%arg0: i32, %arg1: i32) -> (i32, i32) {
    %c0_i32 = arith.constant 0 : i32
    %c0_i32_0 = arith.constant 0 : i32
    %c0_i32_1 = arith.constant 0 : i32
    return %c0_i32, %c0_i32_0 : i32, i32
  }
  func.func @transform_4(%arg0: i32, %arg1: i32) -> (i32, i32) {
    %c0_i32 = arith.constant 0 : i32
    return %arg0, %arg1 : i32, i32
  }
}

module attributes {stable_mosaic.version = 11 : i64} {
  func.func @_tensorized_linear_kernel(%arg0: i32, %arg1: i32, %arg2: memref<16x128xf32, #tpu.memory_space<vmem>>, %arg3: memref<128x128xf32, #tpu.memory_space<vmem>>, %arg4: memref<128x128xf32, #tpu.memory_space<vmem>>, %arg5: memref<1x128xf32, #tpu.memory_space<vmem>>, %arg6: memref<16x128xf32, #tpu.memory_space<vmem>>, %arg7: memref<16x128xf32, #tpu.memory_space<vmem>>) attributes {dimension_semantics = [#tpu.dimension_semantics<parallel>, #tpu.dimension_semantics<arbitrary>], iteration_bounds = array<i64: 1, 1>, scalar_prefetch = 0 : i64, scratch_operands = 1 : i64, tpu.core_type = #tpu.core_type<tc>, window_params = [{transform_indices = @transform_0, window_bounds = array<i64: 16, 128>}, {pipeline_mode = #tpu.pipeline_mode<synchronous>, transform_indices = @transform_1, window_bounds = array<i64: 128, 128>}, {pipeline_mode = #tpu.pipeline_mode<synchronous>, transform_indices = @transform_2, window_bounds = array<i64: 128, 128>}, {pipeline_mode = #tpu.pipeline_mode<synchronous>, transform_indices = @transform_3, window_bounds = array<i64: 1, 128>}, {transform_indices = @transform_4, window_bounds = array<i64: 16, 128>}]} {
    %c0_i32 = arith.constant 0 : i32
    %0 = arith.cmpi eq, %arg1, %c0_i32 : i32
    %1 = arith.extui %0 : i1 to i32
    %c0_i32_0 = arith.constant 0 : i32
    %2 = arith.cmpi ne, %1, %c0_i32_0 : i32
    scf.if %2 {
      %c0_8 = arith.constant 0 : index
      %c0_9 = arith.constant 0 : index
      %10 = vector.load %arg2[%c0_8, %c0_9] : memref<16x128xf32, #tpu.memory_space<vmem>>, vector<16x128xf32>
      %c0_10 = arith.constant 0 : index
      %c0_11 = arith.constant 0 : index
      %11 = vector.load %arg3[%c0_10, %c0_11] : memref<128x128xf32, #tpu.memory_space<vmem>>, vector<128x128xf32>
      %cst_12 = arith.constant dense<0.000000e+00> : vector<16x128xf32>
      %12 = tpu.matmul %10, %11, %cst_12 {dimension_numbers = #tpu.dot_dimension_numbers<[1], [0], [0], [1], [0, 0, 1, 1], [], []>} : vector<16x128xf32>, vector<128x128xf32>, vector<16x128xf32> -> vector<16x128xf32>
      %c0_13 = arith.constant 0 : index
      %c0_14 = arith.constant 0 : index
      %13 = vector.load %arg7[%c0_13, %c0_14] : memref<16x128xf32, #tpu.memory_space<vmem>>, vector<16x128xf32>
      tpu.vector_store %arg7[%c0_13, %c0_14], %12 {strides = array<i32>} : memref<16x128xf32, #tpu.memory_space<vmem>>, vector<16x128xf32>,
    } else {
    }
    %c0 = arith.constant 0 : index
    %c0_1 = arith.constant 0 : index
    %3 = vector.load %arg7[%c0, %c0_1] : memref<16x128xf32, #tpu.memory_space<vmem>>, vector<16x128xf32>
    %c0_2 = arith.constant 0 : index
    %c0_3 = arith.constant 0 : index
    %4 = vector.load %arg4[%c0_2, %c0_3] : memref<128x128xf32, #tpu.memory_space<vmem>>, vector<128x128xf32>
    %cst = arith.constant dense<0.000000e+00> : vector<16x128xf32>
    %5 = tpu.matmul %3, %4, %cst {dimension_numbers = #tpu.dot_dimension_numbers<[1], [0], [0], [1], [0, 0, 1, 1], [], []>} : vector<16x128xf32>, vector<128x128xf32>, vector<16x128xf32> -> vector<16x128xf32>
    %c0_4 = arith.constant 0 : index
    %c0_5 = arith.constant 0 : index
    %6 = vector.load %arg5[%c0_4, %c0_5] : memref<1x128xf32, #tpu.memory_space<vmem>>, vector<1x128xf32>
    %7 = vector.broadcast %6 : vector<1x128xf32> to vector<16x128xf32>
    %8 = arith.addf %5, %7 : vector<16x128xf32>
    %c0_6 = arith.constant 0 : index
    %c0_7 = arith.constant 0 : index
    %9 = vector.load %arg6[%c0_6, %c0_7] : memref<16x128xf32, #tpu.memory_space<vmem>>, vector<16x128xf32>
    tpu.vector_store %arg6[%c0_6, %c0_7], %8 {strides = array<i32>} : memref<16x128xf32, #tpu.memory_space<vmem>>, vector<16x128xf32>,
    return
  }
  func.func @transform_0(%arg0: i32, %arg1: i32) -> (i32, i32) {
    %c0_i32 = arith.constant 0 : i32
    %c0_i32_0 = arith.constant 0 : i32
    return %arg0, %c0_i32 : i32, i32
  }
  func.func @transform_1(%arg0: i32, %arg1: i32) -> (i32, i32) {
    %c0_i32 = arith.constant 0 : i32
    %c0_i32_0 = arith.constant 0 : i32
    %c0_i32_1 = arith.constant 0 : i32
    return %c0_i32, %c0_i32_0 : i32, i32
  }
  func.func @transform_2(%arg0: i32, %arg1: i32) -> (i32, i32) {
    %c0_i32 = arith.constant 0 : i32
    %c0_i32_0 = arith.constant 0 : i32
    %c0_i32_1 = arith.constant 0 : i32
    return %c0_i32, %c0_i32_0 : i32, i32
  }
  func.func @transform_3(%arg0: i32, %arg1: i32) -> (i32, i32) {
    %c0_i32 = arith.constant 0 : i32
    %c0_i32_0 = arith.constant 0 : i32
    %c0_i32_1 = arith.constant 0 : i32
    return %c0_i32, %c0_i32_0 : i32, i32
  }
  func.func @transform_4(%arg0: i32, %arg1: i32) -> (i32, i32) {
    %c0_i32 = arith.constant 0 : i32
    return %arg0, %arg1 : i32, i32
  }
}

</mosaic_0001>

<bundles_post_ra>
// kernel: tpu_custom_call.1
= control target key start
LH: loop header
LB: loop body
LE: loop exit
PB: predicated region body
PF: predicated region fallthrough
CT: control target
= control target key end

     0   :  { %9 = vsyncpa [#allocation4], 0  ;;  %s535_s0 = inlined_call_operand.hbm [shape: f32[16,128], index: 0, kind: input, shape index: {}]   ;;  %s536_s1 = inlined_call_operand.hbm [shape: f32[128,128], index: 1, kind: input, shape index: {}]   ;;  %s537_s2 = inlined_call_operand.hbm [shape: f32[128,128], index: 2, kind: input, shape index: {}]   ;;  %s538_s3 = inlined_call_operand.vmem [shape: f32[1,128], index: 3, kind: input, shape index: {}]   ;;  %s539_s4 = inlined_call_operand.hbm [shape: f32[16,128], index: 4, kind: output, shape index: {}]  }
   0x1   :  { %10 = vsyncpa [#allocation7], 0 }
   0x2   :  { %11 = vsyncpa [#allocation5], 0  ;;  %s477_s15 = smov [#allocation6]   ;;  %s478_s17 = smov [#allocation3]  }
   0x3   :  { %s29_s16 = sshll.u32 %s477_s15, 4  ;;  %s17_s18 = sshll.u32 %s478_s17, 4  ;;  %s30_s16 = int_to_ptr.vmem [resolvable:$true] %s29_s16  ;;  %s18_s18 = int_to_ptr.vmem [resolvable:$true] %s17_s18 }
   0x4   :  { %s399_s19 = scalar_lea.vmem %s30_s16, 2048  ;;  %p404_p1 = scmp.lt.s32.totalorder %s30_s16, %s30_s16 }
   0x5   :  { %p400_p0 = scmp.ne.s32.totalorder %s30_s16, %s399_s19  ;;  %p405_p2 = scmp.lt.s32.totalorder %s399_s19, %s399_s19 }
   0x7   :  { %p406_p3 = por %p405_p2, %p404_p1 }
   0x9   :  { %p407_p4 = pnand %p406_p3, %p400_p0 }
   0xb   :  { %410 = shalt.err (!%p407_p4)
}
   0xc   :  { %s479_s20 = smov 128   ;;  %s480_s21 = smov 8  }
   0xd   :  { %35 = dma.hbm_to_vmem [thread:$0]  %s536_s1, 2048, %s30_s16, [#allocation7], %s479_s20, %s479_s20, %s480_s21  }
   0xe   :  { %s419_s24 = scalar_lea.vmem %s18_s18, 256  ;;  %p424_p6 = scmp.lt.s32.totalorder %s18_s18, %s18_s18 }
   0xf   :  { %p420_p5 = scmp.ne.s32.totalorder %s18_s18, %s419_s24  ;;  %p425_p7 = scmp.lt.s32.totalorder %s419_s24, %s419_s24 }
  0x11   :  { %p426_p8 = por %p425_p7, %p424_p6 }
  0x13   :  { %p427_p9 = pnand %p426_p8, %p420_p5 }
  0x15   :  { %430 = shalt.err (!%p427_p9)
}
  0x16   :  { %23 = dma.hbm_to_vmem [thread:$0]  %s535_s0, 256, %s18_s18, [#allocation4], %s479_s20, %s479_s20, %s480_s21  }
  0x17   :  { %s481_s27 = smov [#allocation8]  }
  0x18   :  { %s41_s28 = sshll.u32 %s481_s27, 4  ;;  %s42_s28 = int_to_ptr.vmem [resolvable:$true] %s41_s28 }
  0x19   :  { %s439_s29 = scalar_lea.vmem %s42_s28, 2048  ;;  %p444_p11 = scmp.lt.s32.totalorder %s42_s28, %s42_s28 }
  0x1a   :  { %p440_p10 = scmp.ne.s32.totalorder %s42_s28, %s439_s29  ;;  %p445_p12 = scmp.lt.s32.totalorder %s439_s29, %s439_s29 }
  0x1c   :  { %p446_p13 = por %p445_p12, %p444_p11 }
  0x1e   :  { %p447_p0 = pnand %p446_p13, %p440_p10 }
  0x20   :  { %450 = shalt.err (!%p447_p0)
}
  0x21   :  { %47 = dma.hbm_to_vmem [thread:$0]  %s537_s2, 2048, %s42_s28, [#allocation7], %s479_s20, %s479_s20, %s480_s21  }
  0x22   :  { %471 = dma.done.wait [#allocation4], 256  }
  0x23   :  { %472 = vsyncadd [#allocation4], 4294967040 }
  0x24   :  { %473 = dma.done.wait [#allocation7], 4096  }
  0x25   :  { %474 = vsyncadd [#allocation7], 4294963200  ;;  %v80_v0 = vld [vmem:[#allocation6 + $0x78] sm:$0xff]  ;;  %v79_v1 = vld [vmem:[#allocation6 + $0x70] sm:$0xff]  ;;  %s482_s5 = smov [#allocation9]  }
  0x26   :  { %315 = vmatprep.subr.mxu0 %v80_v0  ;;  %v78_v2 = vld [vmem:[#allocation6 + $0x68] sm:$0xff]  ;;  %v77_v3 = vld [vmem:[#allocation6 + $0x60] sm:$0xff]  ;;  %v63_v4 = vld [vmem:[#allocation3] sm:$0xff]  ;;  %s265_s6 = sshll.u32 %s482_s5, 4  ;;  %s266_s6 = int_to_ptr.vmem [resolvable:$true] %s265_s6 }
  0x27   :  { %316 = vmatpush3.msra.mxu0 %v80_v0  ;;  %v76_v5 = vld [vmem:[#allocation6 + $0x58] sm:$0xff]  ;;  %347 = vmatprep.mubr.f32.mxu0 %v63_v4  ;;  %v174_v7 = vld [vmem:[#allocation8 + $0x70] sm:$0xff]  ;;  %v173_v9 = vld [vmem:[#allocation8 + $0x68] sm:$0xff]  ;;  %s451_s7 = scalar_lea.vmem %s266_s6, 256  ;;  %p456_p2 = scmp.lt.s32.totalorder %s266_s6, %s266_s6 }
  0x28   :  { %317 = vmatprep.subr.mxu0 %v79_v1  ;;  %v175_v6 = vld [vmem:[#allocation8 + $0x78] sm:$0xff]  ;;  %v75_v8 = vld [vmem:[#allocation6 + $0x50] sm:$0xff]  ;;  %v74_v10 = vld [vmem:[#allocation6 + $0x48] sm:$0xff]  ;;  %p452_p1 = scmp.ne.s32.totalorder %s266_s6, %s451_s7  ;;  %p457_p3 = scmp.lt.s32.totalorder %s451_s7, %s451_s7 }
  0x29   :  { %318 = vmatpush3.msra.mxu0 %v79_v1  ;;  %350 = vmatprep.subr.mxu1 %v175_v6  ;;  %v172_v11 = vld [vmem:[#allocation8 + $0x60] sm:$0xff]  ;;  %v171_v13 = vld [vmem:[#allocation8 + $0x58] sm:$0xff]  ;;  %v170_v15 = vld [vmem:[#allocation8 + $0x50] sm:$0xff] }
  0x2a   :  { %319 = vmatprep.subr.mxu0 %v78_v2  ;;  %351 = vmatpush3.msra.mxu1 %v175_v6  ;;  %v73_v12 = vld [vmem:[#allocation6 + $0x40] sm:$0xff]  ;;  %v72_v14 = vld [vmem:[#allocation6 + $0x38] sm:$0xff]  ;;  %v71_v16 = vld [vmem:[#allocation6 + $0x30] sm:$0xff]  ;;  %p458_p4 = por %p457_p3, %p456_p2 }
  0x2b   :  { %320 = vmatpush3.msra.mxu0 %v78_v2  ;;  %352 = vmatprep.subr.mxu1 %v174_v7  ;;  %v169_v17 = vld [vmem:[#allocation8 + $0x48] sm:$0xff]  ;;  %v168_v19 = vld [vmem:[#allocation8 + $0x40] sm:$0xff]  ;;  %v167_v21 = vld [vmem:[#allocation8 + $0x38] sm:$0xff] }
  0x2c   :  { %321 = vmatprep.subr.mxu0 %v77_v3  ;;  %353 = vmatpush3.msra.mxu1 %v174_v7  ;;  %v70_v18 = vld [vmem:[#allocation6 + $0x28] sm:$0xff]  ;;  %v69_v20 = vld [vmem:[#allocation6 + $0x20] sm:$0xff]  ;;  %v68_v22 = vld [vmem:[#allocation6 + $0x18] sm:$0xff]  ;;  %p459_p5 = pnand %p458_p4, %p452_p1 }
  0x2d   :  { %322 = vmatpush3.msra.mxu0 %v77_v3  ;;  %354 = vmatprep.subr.mxu1 %v173_v9  ;;  %v166_v23 = vld [vmem:[#allocation8 + $0x30] sm:$0xff]  ;;  %v165_v25 = vld [vmem:[#allocation8 + $0x28] sm:$0xff]  ;;  %v164_v27 = vld [vmem:[#allocation8 + $0x20] sm:$0xff] }
  0x2e   :  { %323 = vmatprep.subr.mxu0 %v76_v5  ;;  %355 = vmatpush3.msra.mxu1 %v173_v9  ;;  %v67_v24 = vld [vmem:[#allocation6 + $0x10] sm:$0xff]  ;;  %v66_v26 = vld [vmem:[#allocation6 + $0x8] sm:$0xff]  ;;  %v65_v28 = vld [vmem:[#allocation6] sm:$0xff] }
  0x2f   :  { %324 = vmatpush3.msra.mxu0 %v76_v5  ;;  %356 = vmatprep.subr.mxu1 %v172_v11  ;;  %v163_v29 = vld [vmem:[#allocation8 + $0x18] sm:$0xff]  ;;  %v162_v31 = vld [vmem:[#allocation8 + $0x10] sm:$0xff]  ;;  %v161_v32 = vld [vmem:[#allocation8 + $0x8] sm:$0xff] }
  0x30   :  { %325 = vmatprep.subr.mxu0 %v75_v8  ;;  %357 = vmatpush3.msra.mxu1 %v172_v11  ;;  %v64_v30 = vld [vmem:[#allocation3 + $0x8] sm:$0xff]  ;;  %v160_v33 = vld [vmem:[#allocation8] sm:$0xff]  ;;  %v278_v36 = vld [vmem:[%s538_s3] ss:$0 sm:$0xff] }
  0x31   :  { %326 = vmatpush3.msra.mxu0 %v75_v8  ;;  %358 = vmatprep.subr.mxu1 %v171_v13 }
  0x32   :  { %327 = vmatprep.subr.mxu0 %v74_v10  ;;  %359 = vmatpush3.msra.mxu1 %v171_v13 }
  0x33   :  { %328 = vmatpush3.msra.mxu0 %v74_v10  ;;  %360 = vmatprep.subr.mxu1 %v170_v15 }
  0x34   :  { %329 = vmatprep.subr.mxu0 %v73_v12  ;;  %361 = vmatpush3.msra.mxu1 %v170_v15 }
  0x35   :  { %330 = vmatpush3.msra.mxu0 %v73_v12  ;;  %362 = vmatprep.subr.mxu1 %v169_v17 }
  0x36   :  { %331 = vmatprep.subr.mxu0 %v72_v14  ;;  %363 = vmatpush3.msra.mxu1 %v169_v17 }
  0x37   :  { %332 = vmatpush3.msra.mxu0 %v72_v14  ;;  %364 = vmatprep.subr.mxu1 %v168_v19 }
  0x38   :  { %333 = vmatprep.subr.mxu0 %v71_v16  ;;  %365 = vmatpush3.msra.mxu1 %v168_v19 }
  0x39   :  { %334 = vmatpush3.msra.mxu0 %v71_v16  ;;  %366 = vmatprep.subr.mxu1 %v167_v21 }
  0x3a   :  { %335 = vmatprep.subr.mxu0 %v70_v18  ;;  %367 = vmatpush3.msra.mxu1 %v167_v21 }
  0x3b   :  { %336 = vmatpush3.msra.mxu0 %v70_v18  ;;  %368 = vmatprep.subr.mxu1 %v166_v23 }
  0x3c   :  { %337 = vmatprep.subr.mxu0 %v69_v20  ;;  %369 = vmatpush3.msra.mxu1 %v166_v23 }
  0x3d   :  { %338 = vmatpush3.msra.mxu0 %v69_v20  ;;  %370 = vmatprep.subr.mxu1 %v165_v25 }
  0x3e   :  { %339 = vmatprep.subr.mxu0 %v68_v22  ;;  %371 = vmatpush3.msra.mxu1 %v165_v25 }
  0x3f   :  { %340 = vmatpush3.msra.mxu0 %v68_v22  ;;  %372 = vmatprep.subr.mxu1 %v164_v27 }
  0x40   :  { %341 = vmatprep.subr.mxu0 %v67_v24  ;;  %373 = vmatpush3.msra.mxu1 %v164_v27 }
  0x41   :  { %342 = vmatpush3.msra.mxu0 %v67_v24  ;;  %374 = vmatprep.subr.mxu1 %v163_v29 }
  0x42   :  { %343 = vmatprep.subr.mxu0 %v66_v26  ;;  %375 = vmatpush3.msra.mxu1 %v163_v29 }
  0x43   :  { %344 = vmatpush3.msra.mxu0 %v66_v26  ;;  %376 = vmatprep.subr.mxu1 %v162_v31 }
  0x44   :  { %345 = vmatprep.subr.mxu0 %v65_v28  ;;  %377 = vmatpush3.msra.mxu1 %v162_v31 }
  0x45   :  { %346 = vmatpush3.msra.mxu0 %v65_v28  ;;  %378 = vmatprep.subr.mxu1 %v161_v32 }
  0x46   :  { %348 = vmatmul.mubr.f32.vlgmr.msra.gmra.mxu0 %v64_v30  ;;  %379 = vmatpush3.msra.mxu1 %v161_v32 }
  0x47   :  { %380 = vmatprep.subr.mxu1 %v160_v33 }
  0x48   :  { %381 = vmatpush3.msra.mxu1 %v160_v33 }
 0x106   :  { %v349_v34 = vpop.f32.mrf.mxu0 }
 0x108   :  { %v147_v35 = vpop.f32.mrf.mxu0 }
 0x109   :  { %382 = vmatprep.mubr.f32.mxu1 %v147_v35 }
 0x10a   :  { %383 = vmatmul.mubr.f32.vlgmr.msra.gmra.mxu1 %v349_v34 }
 0x1ca   :  { %v384_v37 = vpop.f32.mrf.mxu1 }
 0x1cb   :  { %v255_v38 = vadd.f32 %v384_v37, %v278_v36 }
 0x1cc   :  { %v249_v39 = vpop.f32.mrf.mxu1 }
 0x1cd   :  { %259 = vst [vmem:[#allocation9 + $0x8] sm:$0xff] %v255_v38  ;;  %v250_v40 = vadd.f32 %v278_v36, %v249_v39 }
 0x1cf   :  { %258 = vst [vmem:[#allocation9] sm:$0xff] %v250_v40 }
 0x1d0   :  { %462 = shalt.err (!%p459_p5)
}
 0x1d1   :  { %271 = dma.vmem_to_hbm [thread:$0]  %s266_s6, 256, %s539_s4, [#allocation5], %s479_s20, %s479_s20, %s480_s21  }
 0x1d2   :  { %475 = dma.done.wait [#allocation5], 256  }
 0x1d3   :  { %476 = vsyncadd [#allocation5], 4294967040 }
 0x1d4   :  { %275 = vsyncpa [#allocation4], 1 }
 0x1d5   :  { %276 = vsyncpa [#allocation7], 1 }
 0x1d6   :  { %277 = vsyncpa [#allocation5], 1 }

// kernel: tpu_custom_call.1
= control target key start
LH: loop header
LB: loop body
LE: loop exit
PB: predicated region body
PF: predicated region fallthrough
CT: control target
= control target key end

     0   :  { %9 = vsyncpa [#allocation4], 0  ;;  %s535_s0 = inlined_call_operand.hbm [shape: f32[16,128], index: 0, kind: input, shape index: {}]   ;;  %s536_s1 = inlined_call_operand.hbm [shape: f32[128,128], index: 1, kind: input, shape index: {}]   ;;  %s537_s2 = inlined_call_operand.hbm [shape: f32[128,128], index: 2, kind: input, shape index: {}]   ;;  %s538_s3 = inlined_call_operand.vmem [shape: f32[1,128], index: 3, kind: input, shape index: {}]   ;;  %s539_s4 = inlined_call_operand.hbm [shape: f32[16,128], index: 4, kind: output, shape index: {}]  }
   0x1   :  { %10 = vsyncpa [#allocation7], 0 }
   0x2   :  { %11 = vsyncpa [#allocation5], 0  ;;  %s477_s15 = smov [#allocation6]   ;;  %s478_s17 = smov [#allocation3]  }
   0x3   :  { %s29_s16 = sshll.u32 %s477_s15, 4  ;;  %s17_s18 = sshll.u32 %s478_s17, 4  ;;  %s30_s16 = int_to_ptr.vmem [resolvable:$true] %s29_s16  ;;  %s18_s18 = int_to_ptr.vmem [resolvable:$true] %s17_s18 }
   0x4   :  { %s399_s19 = scalar_lea.vmem %s30_s16, 2048  ;;  %p404_p1 = scmp.lt.s32.totalorder %s30_s16, %s30_s16 }
   0x5   :  { %p400_p0 = scmp.ne.s32.totalorder %s30_s16, %s399_s19  ;;  %p405_p2 = scmp.lt.s32.totalorder %s399_s19, %s399_s19 }
   0x7   :  { %p406_p3 = por %p405_p2, %p404_p1 }
   0x9   :  { %p407_p4 = pnand %p406_p3, %p400_p0 }
   0xb   :  { %410 = shalt.err (!%p407_p4)
}
   0xc   :  { %s479_s20 = smov 128   ;;  %s480_s21 = smov 8  }
   0xd   :  { %35 = dma.hbm_to_vmem [thread:$0]  %s536_s1, 2048, %s30_s16, [#allocation7], %s479_s20, %s479_s20, %s480_s21  }
   0xe   :  { %s419_s24 = scalar_lea.vmem %s18_s18, 256  ;;  %p424_p6 = scmp.lt.s32.totalorder %s18_s18, %s18_s18 }
   0xf   :  { %p420_p5 = scmp.ne.s32.totalorder %s18_s18, %s419_s24  ;;  %p425_p7 = scmp.lt.s32.totalorder %s419_s24, %s419_s24 }
  0x11   :  { %p426_p8 = por %p425_p7, %p424_p6 }
  0x13   :  { %p427_p9 = pnand %p426_p8, %p420_p5 }
  0x15   :  { %430 = shalt.err (!%p427_p9)
}
  0x16   :  { %23 = dma.hbm_to_vmem [thread:$0]  %s535_s0, 256, %s18_s18, [#allocation4], %s479_s20, %s479_s20, %s480_s21  }
  0x17   :  { %s481_s27 = smov [#allocation8]  }
  0x18   :  { %s41_s28 = sshll.u32 %s481_s27, 4  ;;  %s42_s28 = int_to_ptr.vmem [resolvable:$true] %s41_s28 }
  0x19   :  { %s439_s29 = scalar_lea.vmem %s42_s28, 2048  ;;  %p444_p11 = scmp.lt.s32.totalorder %s42_s28, %s42_s28 }
  0x1a   :  { %p440_p10 = scmp.ne.s32.totalorder %s42_s28, %s439_s29  ;;  %p445_p12 = scmp.lt.s32.totalorder %s439_s29, %s439_s29 }
  0x1c   :  { %p446_p13 = por %p445_p12, %p444_p11 }
  0x1e   :  { %p447_p0 = pnand %p446_p13, %p440_p10 }
  0x20   :  { %450 = shalt.err (!%p447_p0)
}
  0x21   :  { %47 = dma.hbm_to_vmem [thread:$0]  %s537_s2, 2048, %s42_s28, [#allocation7], %s479_s20, %s479_s20, %s480_s21  }
  0x22   :  { %471 = dma.done.wait [#allocation4], 256  }
  0x23   :  { %472 = vsyncadd [#allocation4], 4294967040 }
  0x24   :  { %473 = dma.done.wait [#allocation7], 4096  }
  0x25   :  { %474 = vsyncadd [#allocation7], 4294963200  ;;  %v80_v0 = vld [vmem:[#allocation6 + $0x78] sm:$0xff]  ;;  %v79_v1 = vld [vmem:[#allocation6 + $0x70] sm:$0xff]  ;;  %s482_s5 = smov [#allocation9]  }
  0x26   :  { %315 = vmatprep.subr.mxu0 %v80_v0  ;;  %v78_v2 = vld [vmem:[#allocation6 + $0x68] sm:$0xff]  ;;  %v77_v3 = vld [vmem:[#allocation6 + $0x60] sm:$0xff]  ;;  %v63_v4 = vld [vmem:[#allocation3] sm:$0xff]  ;;  %s265_s6 = sshll.u32 %s482_s5, 4  ;;  %s266_s6 = int_to_ptr.vmem [resolvable:$true] %s265_s6 }
  0x27   :  { %316 = vmatpush3.msra.mxu0 %v80_v0  ;;  %v76_v5 = vld [vmem:[#allocation6 + $0x58] sm:$0xff]  ;;  %347 = vmatprep.mubr.f32.mxu0 %v63_v4  ;;  %v174_v7 = vld [vmem:[#allocation8 + $0x70] sm:$0xff]  ;;  %v173_v9 = vld [vmem:[#allocation8 + $0x68] sm:$0xff]  ;;  %s451_s7 = scalar_lea.vmem %s266_s6, 256  ;;  %p456_p2 = scmp.lt.s32.totalorder %s266_s6, %s266_s6 }
  0x28   :  { %317 = vmatprep.subr.mxu0 %v79_v1  ;;  %v175_v6 = vld [vmem:[#allocation8 + $0x78] sm:$0xff]  ;;  %v75_v8 = vld [vmem:[#allocation6 + $0x50] sm:$0xff]  ;;  %v74_v10 = vld [vmem:[#allocation6 + $0x48] sm:$0xff]  ;;  %p452_p1 = scmp.ne.s32.totalorder %s266_s6, %s451_s7  ;;  %p457_p3 = scmp.lt.s32.totalorder %s451_s7, %s451_s7 }
  0x29   :  { %318 = vmatpush3.msra.mxu0 %v79_v1  ;;  %350 = vmatprep.subr.mxu1 %v175_v6  ;;  %v172_v11 = vld [vmem:[#allocation8 + $0x60] sm:$0xff]  ;;  %v171_v13 = vld [vmem:[#allocation8 + $0x58] sm:$0xff]  ;;  %v170_v15 = vld [vmem:[#allocation8 + $0x50] sm:$0xff] }
  0x2a   :  { %319 = vmatprep.subr.mxu0 %v78_v2  ;;  %351 = vmatpush3.msra.mxu1 %v175_v6  ;;  %v73_v12 = vld [vmem:[#allocation6 + $0x40] sm:$0xff]  ;;  %v72_v14 = vld [vmem:[#allocation6 + $0x38] sm:$0xff]  ;;  %v71_v16 = vld [vmem:[#allocation6 + $0x30] sm:$0xff]  ;;  %p458_p4 = por %p457_p3, %p456_p2 }
  0x2b   :  { %320 = vmatpush3.msra.mxu0 %v78_v2  ;;  %352 = vmatprep.subr.mxu1 %v174_v7  ;;  %v169_v17 = vld [vmem:[#allocation8 + $0x48] sm:$0xff]  ;;  %v168_v19 = vld [vmem:[#allocation8 + $0x40] sm:$0xff]  ;;  %v167_v21 = vld [vmem:[#allocation8 + $0x38] sm:$0xff] }
  0x2c   :  { %321 = vmatprep.subr.mxu0 %v77_v3  ;;  %353 = vmatpush3.msra.mxu1 %v174_v7  ;;  %v70_v18 = vld [vmem:[#allocation6 + $0x28] sm:$0xff]  ;;  %v69_v20 = vld [vmem:[#allocation6 + $0x20] sm:$0xff]  ;;  %v68_v22 = vld [vmem:[#allocation6 + $0x18] sm:$0xff]  ;;  %p459_p5 = pnand %p458_p4, %p452_p1 }
  0x2d   :  { %322 = vmatpush3.msra.mxu0 %v77_v3  ;;  %354 = vmatprep.subr.mxu1 %v173_v9  ;;  %v166_v23 = vld [vmem:[#allocation8 + $0x30] sm:$0xff]  ;;  %v165_v25 = vld [vmem:[#allocation8 + $0x28] sm:$0xff]  ;;  %v164_v27 = vld [vmem:[#allocation8 + $0x20] sm:$0xff] }
  0x2e   :  { %323 = vmatprep.subr.mxu0 %v76_v5  ;;  %355 = vmatpush3.msra.mxu1 %v173_v9  ;;  %v67_v24 = vld [vmem:[#allocation6 + $0x10] sm:$0xff]  ;;  %v66_v26 = vld [vmem:[#allocation6 + $0x8] sm:$0xff]  ;;  %v65_v28 = vld [vmem:[#allocation6] sm:$0xff] }
  0x2f   :  { %324 = vmatpush3.msra.mxu0 %v76_v5  ;;  %356 = vmatprep.subr.mxu1 %v172_v11  ;;  %v163_v29 = vld [vmem:[#allocation8 + $0x18] sm:$0xff]  ;;  %v162_v31 = vld [vmem:[#allocation8 + $0x10] sm:$0xff]  ;;  %v161_v32 = vld [vmem:[#allocation8 + $0x8] sm:$0xff] }
  0x30   :  { %325 = vmatprep.subr.mxu0 %v75_v8  ;;  %357 = vmatpush3.msra.mxu1 %v172_v11  ;;  %v64_v30 = vld [vmem:[#allocation3 + $0x8] sm:$0xff]  ;;  %v160_v33 = vld [vmem:[#allocation8] sm:$0xff]  ;;  %v278_v36 = vld [vmem:[%s538_s3] ss:$0 sm:$0xff] }
  0x31   :  { %326 = vmatpush3.msra.mxu0 %v75_v8  ;;  %358 = vmatprep.subr.mxu1 %v171_v13 }
  0x32   :  { %327 = vmatprep.subr.mxu0 %v74_v10  ;;  %359 = vmatpush3.msra.mxu1 %v171_v13 }
  0x33   :  { %328 = vmatpush3.msra.mxu0 %v74_v10  ;;  %360 = vmatprep.subr.mxu1 %v170_v15 }
  0x34   :  { %329 = vmatprep.subr.mxu0 %v73_v12  ;;  %361 = vmatpush3.msra.mxu1 %v170_v15 }
  0x35   :  { %330 = vmatpush3.msra.mxu0 %v73_v12  ;;  %362 = vmatprep.subr.mxu1 %v169_v17 }
  0x36   :  { %331 = vmatprep.subr.mxu0 %v72_v14  ;;  %363 = vmatpush3.msra.mxu1 %v169_v17 }
  0x37   :  { %332 = vmatpush3.msra.mxu0 %v72_v14  ;;  %364 = vmatprep.subr.mxu1 %v168_v19 }
  0x38   :  { %333 = vmatprep.subr.mxu0 %v71_v16  ;;  %365 = vmatpush3.msra.mxu1 %v168_v19 }
  0x39   :  { %334 = vmatpush3.msra.mxu0 %v71_v16  ;;  %366 = vmatprep.subr.mxu1 %v167_v21 }
  0x3a   :  { %335 = vmatprep.subr.mxu0 %v70_v18  ;;  %367 = vmatpush3.msra.mxu1 %v167_v21 }
  0x3b   :  { %336 = vmatpush3.msra.mxu0 %v70_v18  ;;  %368 = vmatprep.subr.mxu1 %v166_v23 }
  0x3c   :  { %337 = vmatprep.subr.mxu0 %v69_v20  ;;  %369 = vmatpush3.msra.mxu1 %v166_v23 }
  0x3d   :  { %338 = vmatpush3.msra.mxu0 %v69_v20  ;;  %370 = vmatprep.subr.mxu1 %v165_v25 }
  0x3e   :  { %339 = vmatprep.subr.mxu0 %v68_v22  ;;  %371 = vmatpush3.msra.mxu1 %v165_v25 }
  0x3f   :  { %340 = vmatpush3.msra.mxu0 %v68_v22  ;;  %372 = vmatprep.subr.mxu1 %v164_v27 }
  0x40   :  { %341 = vmatprep.subr.mxu0 %v67_v24  ;;  %373 = vmatpush3.msra.mxu1 %v164_v27 }
  0x41   :  { %342 = vmatpush3.msra.mxu0 %v67_v24  ;;  %374 = vmatprep.subr.mxu1 %v163_v29 }
  0x42   :  { %343 = vmatprep.subr.mxu0 %v66_v26  ;;  %375 = vmatpush3.msra.mxu1 %v163_v29 }
  0x43   :  { %344 = vmatpush3.msra.mxu0 %v66_v26  ;;  %376 = vmatprep.subr.mxu1 %v162_v31 }
  0x44   :  { %345 = vmatprep.subr.mxu0 %v65_v28  ;;  %377 = vmatpush3.msra.mxu1 %v162_v31 }
  0x45   :  { %346 = vmatpush3.msra.mxu0 %v65_v28  ;;  %378 = vmatprep.subr.mxu1 %v161_v32 }
  0x46   :  { %348 = vmatmul.mubr.f32.vlgmr.msra.gmra.mxu0 %v64_v30  ;;  %379 = vmatpush3.msra.mxu1 %v161_v32 }
  0x47   :  { %380 = vmatprep.subr.mxu1 %v160_v33 }
  0x48   :  { %381 = vmatpush3.msra.mxu1 %v160_v33 }
 0x106   :  { %v349_v34 = vpop.f32.mrf.mxu0 }
 0x108   :  { %v147_v35 = vpop.f32.mrf.mxu0 }
 0x109   :  { %382 = vmatprep.mubr.f32.mxu1 %v147_v35 }
 0x10a   :  { %383 = vmatmul.mubr.f32.vlgmr.msra.gmra.mxu1 %v349_v34 }
 0x1ca   :  { %v384_v37 = vpop.f32.mrf.mxu1 }
 0x1cb   :  { %v255_v38 = vadd.f32 %v384_v37, %v278_v36 }
 0x1cc   :  { %v249_v39 = vpop.f32.mrf.mxu1 }
 0x1cd   :  { %259 = vst [vmem:[#allocation9 + $0x8] sm:$0xff] %v255_v38  ;;  %v250_v40 = vadd.f32 %v278_v36, %v249_v39 }
 0x1cf   :  { %258 = vst [vmem:[#allocation9] sm:$0xff] %v250_v40 }
 0x1d0   :  { %462 = shalt.err (!%p459_p5)
}
 0x1d1   :  { %271 = dma.vmem_to_hbm [thread:$0]  %s266_s6, 256, %s539_s4, [#allocation5], %s479_s20, %s479_s20, %s480_s21  }
 0x1d2   :  { %475 = dma.done.wait [#allocation5], 256  }
 0x1d3   :  { %476 = vsyncadd [#allocation5], 4294967040 }
 0x1d4   :  { %275 = vsyncpa [#allocation4], 1 }
 0x1d5   :  { %276 = vsyncpa [#allocation7], 1 }
 0x1d6   :  { %277 = vsyncpa [#allocation5], 1 }

</bundles_post_ra>
